<compile_context>
chip_gen: v5e
topology: v5e:2x2
jax: 0.10.0
libtpu: 0.0.40
codegen_flags: <defaults>
</compile_context>

<pallas_src>
import jax
import jax.numpy as jnp
from jax import lax
from jax.experimental import pallas as pl
from jax.experimental.pallas import tpu as pltpu


def _round_up(a: int, b: int) -> int:
    return ((a + b - 1) // b) * b


def conv_as_matvec_kernel(x_ref, w_ref, o_ref):
    # x_ref: (TM, K) activation tile   w_ref: (1, K) resident weight row
    # o_ref: (1, TM) lane-dense output tile
    o_ref[...] = lax.dot_general(
        w_ref[...],
        x_ref[...],
        dimension_numbers=(((1,), (1,)), ((), ())),   # contract over K
        preferred_element_type=jnp.float32,
    ).astype(o_ref.dtype)


def net_forward(x_nchw, conv_weight, *, tm: int = 2048, small_batch_cutoff: int = 256):
    """Equivalent of Net.forward: conv2d(1->1, k=28, stride=1, no bias) then view(-1, 1)."""
    N, C, H, W = x_nchw.shape
    OC, IC, KH, KW = conv_weight.shape
    assert (C, IC, OC) == (1, 1, 1) and (H, W) == (KH, KW), (
        "kernel implements the full-frame conv case (spatial == kernel size), "
        "which is what Net is built for (28x28 inputs)"
    )
    K = C * H * W                      # 784 (left un-padded; no extra HBM traffic)

    x_flat = x_nchw.reshape(N, K)      # (N, 784)
    w_row = conv_weight.reshape(1, K)  # (1, 784)

    # Small-batch fast path: XLA's fused dot beats pallas_call launch overhead.
    if N <= small_batch_cutoff:
        out = jnp.dot(x_flat, w_row.T, preferred_element_type=jnp.float32)
        return out.astype(x_nchw.dtype)

    # Clamp the batch tile: multiple of 128, bounded, no bigger than needed.
    tm = max(128, (min(tm, 4096) // 128) * 128)
    tm = min(tm, _round_up(N, 128))
    num_blocks = pl.cdiv(N, tm)
    n_out = num_blocks * tm            # output padded to full blocks (unmasked stores)

    out_row = pl.pallas_call(
        conv_as_matvec_kernel,
        out_shape=jax.ShapeDtypeStruct((1, n_out), jnp.float32),
        grid=(num_blocks,),
        in_specs=[
            # x tile streams per grid step; last dim == full array dim (784),
            # so it is exempt from the 128-lane divisibility rule.
            pl.BlockSpec((tm, K), lambda i: (i, 0)),
            # weight row resident across the whole grid.
            pl.BlockSpec((1, K), lambda i: (0, 0)),
        ],
        out_specs=pl.BlockSpec((1, tm), lambda i: (0, i)),   # lane-dense output tile
        compiler_params=pltpu.CompilerParams(
            dimension_semantics=("parallel",),
            # Room for the double-buffered x tile on every generation
            # (32 MiB <= scoped/physical VMEM on v5e/v6e/v7x).
            vmem_limit_bytes=max(2 * tm * K * 4 + (4 << 20), 32 << 20),
        ),
        cost_estimate=pl.CostEstimate(
            flops=2 * N * K,
            bytes_accessed=4 * (N * K + K + N),
            transcendentals=0,
        ),
    )(x_flat, w_row)

    # (1, n_out) -> (N, 1): same values as conv1(x).view(-1, 1); padded tail dropped.
    return out_row[0, :N].reshape(N, 1).astype(x_nchw.dtype)


def xavier_uniform_conv_weight(key, shape):
    """torch.nn.init.xavier_uniform_ for a Conv2d weight of `shape` = (OC, IC, KH, KW)."""
    oc, ic, kh, kw = shape
    receptive = kh * kw
    fan_in = ic * receptive
    fan_out = oc * receptive
    bound = jnp.sqrt(6.0 / (fan_in + fan_out))
    return jax.random.uniform(key, shape, jnp.float32, minval=-bound, maxval=bound)


if __name__ == "__main__":
    key = jax.random.PRNGKey(0)
    k_w, k_x, k_x2, k_x3 = jax.random.split(key, 4)

    conv_weight = xavier_uniform_conv_weight(k_w, (1, 1, 28, 28))
    w_flat = conv_weight.reshape(1, -1)

    # 1) Small-batch case implied by the module (N=2) -> fast path.
    x = jax.random.normal(k_x, (2, 1, 28, 28), jnp.float32)
    out = jax.block_until_ready(net_forward(x, conv_weight))
    ref = x.reshape(2, -1) @ w_flat.T
    assert out.shape == (2, 1)
    assert jnp.allclose(out, ref, atol=1e-5, rtol=1e-5)

    # 2) Multi-step grid with a partial trailing batch block (N=300, tm=128).
    x_tail = jax.random.normal(k_x2, (300, 1, 28, 28), jnp.float32)
    out_tail = jax.block_until_ready(net_forward(x_tail, conv_weight, tm=128))
    ref_tail = x_tail.reshape(300, -1) @ w_flat.T
    assert out_tail.shape == (300, 1)
    assert jnp.allclose(out_tail, ref_tail, atol=1e-5, rtol=1e-5)

    # 3) Default-tile Pallas path (tile clamps to the batch; single grid step).
    x_big = jax.random.normal(k_x3, (384, 1, 28, 28), jnp.float32)
    out_big = jax.block_until_ready(net_forward(x_big, conv_weight))
    ref_big = x_big.reshape(384, -1) @ w_flat.T
    assert out_big.shape == (384, 1)
    assert jnp.allclose(out_big, ref_big, atol=1e-5, rtol=1e-5)

    print("KERNEL_OK")
</pallas_src>

<mosaic_0001>
module attributes {stable_mosaic.version = 11 : i64} {
  func.func @conv_as_matvec_kernel(%arg0: i32, %arg1: memref<128x784xf32, #tpu.memory_space<vmem>>, %arg2: memref<1x784xf32, #tpu.memory_space<vmem>>, %arg3: memref<1x128xf32, #tpu.memory_space<vmem>>) attributes {dimension_semantics = [#tpu.dimension_semantics<parallel>], iteration_bounds = array<i64: 3>, scalar_prefetch = 0 : i64, scratch_operands = 0 : i64, tpu.core_type = #tpu.core_type<tc>, window_params = [{transform_indices = @transform_0, window_bounds = array<i64: 128, 784>}, {pipeline_mode = #tpu.pipeline_mode<synchronous>, transform_indices = @transform_1, window_bounds = array<i64: 1, 784>}, {transform_indices = @transform_2, window_bounds = array<i64: 1, 128>}]} {
    %c0 = arith.constant 0 : index
    %c0_0 = arith.constant 0 : index
    %0 = vector.load %arg2[%c0, %c0_0] : memref<1x784xf32, #tpu.memory_space<vmem>>, vector<1x784xf32>
    %c0_1 = arith.constant 0 : index
    %c0_2 = arith.constant 0 : index
    %1 = vector.load %arg1[%c0_1, %c0_2] : memref<128x784xf32, #tpu.memory_space<vmem>>, vector<128x784xf32>
    %cst = arith.constant dense<0.000000e+00> : vector<1x128xf32>
    %2 = tpu.matmul %0, %1, %cst {dimension_numbers = #tpu.dot_dimension_numbers<[1], [1], [0], [0], [0, 0, 1, 0], [], []>} : vector<1x784xf32>, vector<128x784xf32>, vector<1x128xf32> -> vector<1x128xf32>
    %c0_3 = arith.constant 0 : index
    %c0_4 = arith.constant 0 : index
    %3 = vector.load %arg3[%c0_3, %c0_4] : memref<1x128xf32, #tpu.memory_space<vmem>>, vector<1x128xf32>
    tpu.vector_store %arg3[%c0_3, %c0_4], %2 {strides = array<i32>} : memref<1x128xf32, #tpu.memory_space<vmem>>, vector<1x128xf32>,
    return
  }
  func.func @transform_0(%arg0: i32) -> (i32, i32) {
    %c0_i32 = arith.constant 0 : i32
    %c0_i32_0 = arith.constant 0 : i32
    return %arg0, %c0_i32 : i32, i32
  }
  func.func @transform_1(%arg0: i32) -> (i32, i32) {
    %c0_i32 = arith.constant 0 : i32
    %c0_i32_0 = arith.constant 0 : i32
    %c0_i32_1 = arith.constant 0 : i32
    return %c0_i32, %c0_i32_0 : i32, i32
  }
  func.func @transform_2(%arg0: i32) -> (i32, i32) {
    %c0_i32 = arith.constant 0 : i32
    %c0_i32_0 = arith.constant 0 : i32
    return %c0_i32, %arg0 : i32, i32
  }
}

</mosaic_0001>

<bundles_post_ra>
// kernel: tpu_custom_call.1
= control target key start
LH: loop header
LB: loop body
LE: loop exit
PB: predicated region body
PF: predicated region fallthrough
CT: control target
= control target key end

     0   :  { %7 = vsyncpa [#allocation3], 0  ;;  %s1153_s0 = inlined_call_operand.hbm [shape: f32[300,784], index: 0, kind: input, shape index: {}]   ;;  %s1154_s1 = inlined_call_operand.hbm [shape: f32[1,784], index: 1, kind: input, shape index: {}]   ;;  %s1155_s2 = inlined_call_operand.hbm [shape: f32[1,384], index: 2, kind: output, shape index: {}]  }
   0x1   :  { %9 = vsyncpa [#allocation3 + $0x1], 0 }
   0x2   :  { %10 = vsyncpa [#allocation6], 0 }
   0x3   :  { %11 = vsyncpa [#allocation4], 0 }
   0x4   :  { %13 = vsyncpa [#allocation4 + $0x1], 0  ;;  %s849_s9 = smov 0   ;;  %s851_s10 = smov 0  }
   0x5   :  { %s853_s11 = smov 0   ;;  %s855_s12 = smov 0  }
   0x6 LB: > { %s870_s13 = sadd.s32 4294967295, %s828_s12   ;;  %s601_s14 = sadd.s32 4294967294, %s828_s12   ;;  %s828_s12 = sphi %s855_s12, %s1169_s12   ;;  %s824_s11 = sphi %s853_s11, %s1168_s11   ;;  %s820_s10 = sphi %s851_s10, %s1167_s10   ;;  %s816_s9 = sphi %s849_s9, %s1166_s9  }
   0x7   : > { %s874_s15 = sadd.s32 1, %s828_s12   ;;  %s26_s16 = sadd.s32 1, %s824_s11 }
   0x8   : > { %s23_s17 = ssub.s32 %s828_s12, %s874_s15  ;;  %p33_p0 = scmp.ne.s32.totalorder %s824_s11, %s820_s10 }
   0x9   : > { %p24_p1 = scmp.eq.s32.totalorder %s23_s17, 0  ;;  %p34_p2 = scmp.eq.s32.totalorder %s828_s12, 0 }
   0xa   : > { %p39_p3 = scmp.ne.s32.totalorder %s820_s10, %s816_s9  ;;  %p1156_p4 = scmp.eq.s32.totalorder %s870_s13, 0 }
   0xb   : > { %s886_s18 = scalar_select %p24_p1, %s824_s11, %s26_s16  }
   0xc   : > { %p888_p5 = por %p34_p2, %p33_p0  ;;  %p894_p6 = por %p1156_p4, %p39_p3 }
   0xd   : > { %p84_p7 = scmp.eq.s32.totalorder %s870_s13, 2  ;;  %p90_p8 = scmp.eq.s32.totalorder %s601_s14, 2 }
   0xe   : > { %p602_p9 = scmp.ge.s32.totalorder %s828_s12, 1  ;;  %p97_p10 = scmp.lt.s32.totalorder %s828_s12, 4 }
   0xf   : > { %p901_p11 = por %p84_p7, %p33_p0  ;;  %p905_p12 = por %p90_p8, %p39_p3 }
  0x10   : > { %p909_p13 = pnand %p602_p9, %p97_p10  ;;  %s109_s26 = sshll.u32 %s1154_s1, 4  ;;  %s110_s26 = int_to_ptr.hbm [resolvable:$true] %s109_s26 }
  0x11   : > { %s1160_s22 = scalar_select %p905_p12, 1, 0 }
  0x12   : > { %p643_p1 = pneg %p909_p13  ;;  %s830_s27 = smov [#allocation5]  }
  0x13   : > { %s111_s28 = sshll.u32 %s830_s27, 4  ;;  %p604_p2 = scmp.ge.s32.totalorder %s828_s12, 3  ;;  %s112_s28 = int_to_ptr.vmem [resolvable:$true] %s111_s28 }
  0x14   : > { %p644_p0 = pnand %p643_p1, %p1156_p4 }
  0x15   : > { %118 = sbr.rel (%p604_p2) target bundleno = 67 (0x43), region = 20 }
  0x16   : > { %646 = dma.hbm_to_vmem [thread:$0]  (!%p644_p0), %s110_s26, 112, %s112_s28, [#allocation6]  }
  0x1a   : > { %121 = sbr.rel (!%p888_p5) target bundleno = 67 (0x43), region = 24  ;;  %s122_s29 = sand.u32 (%p888_p5), 1, %s824_s11  }
  0x1b   : > { %s605_s30 = sshll.u32 (%p888_p5), %s828_s12, 4  ;;  %s633_s3 = smul.u32 (%p888_p5), 896, %s122_s29 }
  0x1c   : > { %s128_s4 = ssub.s32 (%p888_p5), 38, %s605_s30  ;;  %s925_s8 = scalar_lea.sflag (%p888_p5), [#allocation3], %s122_s29 }
  0x1d   : > { %p129_p3 = scmp.lt.s32.totalorder (%p888_p5), %s128_s4, 16  ;;  %s126_s14 = scalar_lea.vmem (%p888_p5), [#allocation2], %s633_s3 }
  0x1f   : > { %s1171_s4 = smov (!%p129_p3, %s128_s4), 16 }
  0x20   : > { %s607_s5 = smul.u32 56, %s1171_s4 }
  0x22   : > { %s133_s6 = ssub.s32 896, %s607_s5 }
  0x23   : > { %s134_s7 = sshll.u32 %s133_s6, 4 }
  0x24   : > { %135 = vsyncadd %s925_s8, %s134_s7  ;;  %p928_p7 = scmp.ne.s32.totalorder %s607_s5, 0  ;;  %s634_s17 = smul.u32 896, %s828_s12 }
  0x25   : > { %s933_s19 = sshll.u32 %s126_s14, 4  ;;  %s935_s24 = smul.u32 896, %s1171_s4  ;;  %s144_s19 = int_to_ptr.vmem [resolvable:$true] %s933_s19 }
  0x26   : > { %s139_s27 = scalar_lea.hbm %s1153_s0, %s634_s17  ;;  %s730_s14 = scalar_lea.hbm %s1153_s0, 2128 }
  0x27   : > { %s141_s28 = sshll.u32 %s139_s27, 4  ;;  %s721_s30 = sshrl.u32 %s935_s24, 4  ;;  %s941_s28 = int_to_ptr.hbm [resolvable:$true] %s141_s28 }
  0x28   : > { %s719_s29 = sshra.s32 %s941_s28, 4  ;;  %s757_s3 = sshll.u32 %s721_s30, 4  ;;  %s720_s29 = int_to_ptr.hbm [resolvable:$true] %s719_s29 }
  0x29   : > { %p723_p5 = scmp.ne.s32.totalorder %s757_s3, %s935_s24  ;;  %s724_s5 = sadd.s32 1, %s721_s30 }
  0x2a   : > { %p731_p1 = scmp.lt.s32.totalorder %s720_s29, %s1153_s0 }
  0x2b   : > { %s1173_s5 = smov (!%p723_p5, %s724_s5), %s721_s30 }
  0x2c   : > { %s726_s4 = scalar_lea.hbm %s720_s29, %s1173_s5 }
  0x2d   : > { %p727_p8 = scmp.ne.s32.totalorder %s720_s29, %s726_s4  ;;  %p732_p0 = scmp.lt.s32.totalorder %s730_s14, %s726_s4 }
  0x2f   : > { %p728_p9 = pnand %p727_p8, %p928_p7  ;;  %p733_p2 = por %p732_p0, %p731_p1 }
  0x31   : > { %p729_p10 = pneg %p728_p9 }
  0x33   : > { %p734_p3 = pnand %p733_p2, %p729_p10 }
  0x35   : > { %737 = shalt.err (!%p734_p3)
}
  0x36   : > { %s738_s26 = sshra.s32 %s144_s19, 4  ;;  %s831_s30 = smov [#allocation2]   ;;  %s739_s26 = int_to_ptr.vmem [resolvable:$true] %s738_s26 }
  0x37   : > { %s745_s27 = scalar_lea.vmem %s739_s26, %s1173_s5  ;;  %s749_s3 = scalar_lea.vmem %s831_s30, 1792 }
  0x38   : > { %p746_p5 = scmp.ne.s32.totalorder %s739_s26, %s745_s27  ;;  %p751_p4 = scmp.lt.s32.totalorder %s749_s3, %s745_s27 }
  0x3a   : > { %p747_p8 = pnand %p746_p5, %p928_p7 }
  0x3c   : > { %p748_p9 = pneg %p747_p8 }
  0x3e   : > { %p753_p12 = pnand %p751_p4, %p748_p9 }
  0x40   : > { %756 = shalt.err (!%p753_p12)
}
  0x41   : > { %s832_s29 = smov 896   ;;  %s833_s4 = smov 56  }
  0x42   : > { %149 = dma.hbm_to_vmem [thread:$0]  (%p928_p7), %s941_s28, %s935_s24, %s144_s19, %s925_s8, %s832_s29, %s832_s29, %s833_s4  }
  0x43 PF: > { %155 = sbr.rel (%p909_p13) target bundleno = 341 (0x155), region = 28  ;;  %s968_s5 = sand.u32 (!%p909_p13), 1, %s820_s10  }
  0x44   : > { %s635_s6 = smul.u32 (!%p909_p13), 896, %s968_s5  ;;  %s158_s7 = scalar_lea.sflag (!%p909_p13), [#allocation3], %s968_s5 }
  0x46   : > { %s972_s14 = scalar_lea.vmem (!%p909_p13), [#allocation2], %s635_s6 }
  0x48   : > { %803 = dma.done.wait (%p894_p6), %s158_s7, 14336  }
  0x49   : > { %805 = vsyncadd (%p894_p6), %s158_s7, 4294952960  ;;  %p1163_p4 = scmp.eq.s32.totalorder %s870_s13, 0 }
  0x4b   : > { %807 = dma.done.wait (%p1163_p4), [#allocation6], 112   ;;  %p1164_p12 = pmov %p1163_p4 }
  0x4c   : > { %v299_v0 = vld [vmem:[%s972_s14 + $0x348] sm:$0xff]  ;;  %v301_v1 = vld [vmem:[%s972_s14 + $0x358] sm:$0xff]  ;;  %v300_v2 = vld [vmem:[%s972_s14 + $0x350] sm:$0xff]  ;;  %vm320_vm0 = vcmask 130048   ;;  %s521_s8 = scalar_lea.hbm %s1155_s2, %s870_s13  ;;  %s186_s16 = scalar_lea.vmem [#allocation7], %s968_s5 }
  0x4d   : > { %809 = vsyncadd (%p1164_p12), [#allocation6], 4294967184  ;;  %371 = vmatpush.xpose.msra.mxu0 %v299_v0  ;;  %411 = vmatpush.xpose.msra.mxu2 %v301_v1  ;;  %v292_v3 = vld [vmem:[%s972_s14 + $0x310] sm:$0xff]  ;;  %v294_v4 = vld [vmem:[%s972_s14 + $0x320] sm:$0xff]  ;;  %s523_s19 = sshll.u32 %s186_s16, 4  ;;  %s525_s24 = sshll.u32 %s521_s8, 4  ;;  %s524_s19 = int_to_ptr.vmem [resolvable:$true] %s523_s19  ;;  %s526_s24 = int_to_ptr.hbm [resolvable:$true] %s525_s24 }
  0x4e   : > { %391 = vmatpush.xpose.msra.mxu1 %v300_v2  ;;  %v293_v5 = vld [vmem:[%s972_s14 + $0x318] sm:$0xff]  ;;  %v287_v7 = vld [vmem:[%s972_s14 + $0x2e8] sm:$0xff]  ;;  %v286_v8 = vld [vmem:[%s972_s14 + $0x2e0] sm:$0xff]  ;;  %s513_s28 = scalar_lea.sflag [#allocation4], %s968_s5  ;;  %s772_s17 = sshra.s32 %s526_s24, 4  ;;  %s773_s17 = int_to_ptr.hbm [resolvable:$true] %s772_s17 }
  0x4f   : > { %v285_v6 = vld [vmem:[%s972_s14 + $0x2d8] sm:$0xff]  ;;  %v278_v9 = vld [vmem:[%s972_s14 + $0x2a0] sm:$0xff]  ;;  %v280_v10 = vld [vmem:[%s972_s14 + $0x2b0] sm:$0xff]  ;;  %s774_s25 = scalar_lea.hbm %s773_s17, 1  ;;  %s778_s27 = scalar_lea.hbm %s1155_s2, 3 }
  0x50   : > { %v279_v11 = vld [vmem:[%s972_s14 + $0x2a8] sm:$0xff]  ;;  %v273_v13 = vld [vmem:[%s972_s14 + $0x278] sm:$0xff]  ;;  %v272_v14 = vld [vmem:[%s972_s14 + $0x270] sm:$0xff]  ;;  %p775_p6 = scmp.ne.s32.totalorder %s773_s17, %s774_s25  ;;  %p779_p10 = scmp.lt.s32.totalorder %s773_s17, %s1155_s2 }
  0x51   : > { %372 = vmatpush.xpose.msra.mxu0 %v292_v3  ;;  %412 = vmatpush.xpose.msra.mxu2 %v294_v4  ;;  %v271_v12 = vld [vmem:[%s972_s14 + $0x268] sm:$0xff]  ;;  %v264_v15 = vld [vmem:[%s972_s14 + $0x230] sm:$0xff]  ;;  %v266_v16 = vld [vmem:[%s972_s14 + $0x240] sm:$0xff]  ;;  %p780_p1 = scmp.lt.s32.totalorder %s778_s27, %s774_s25 }
  0x52   : > { %392 = vmatpush.xpose.msra.mxu1 %v293_v5  ;;  %v265_v17 = vld [vmem:[%s972_s14 + $0x238] sm:$0xff]  ;;  %v302_v18 = vld [vmem:[%s972_s14 + $0x360] sm:$0xff]  ;;  %v259_v20 = vld [vmem:[%s972_s14 + $0x208] sm:$0xff]  ;;  %p776_p13 = pnand %p775_p6, %p901_p11 }
  0x53   : > { %v257_v19 = vld [vmem:[%s972_s14 + $0x1f8] sm:$0xff]  ;;  %431 = vmatpush.xpose.msra.mxu3 %v302_v18  ;;  %v258_v21 = vld [vmem:[%s972_s14 + $0x200] sm:$0xff]  ;;  %v295_v22 = vld [vmem:[%s972_s14 + $0x328] sm:$0xff]  ;;  %p781_p0 = por %p780_p1, %p779_p10 }
  0x54   : > { %v250_v23 = vld [vmem:[%s972_s14 + $0x1c0] sm:$0xff]  ;;  %v252_v24 = vld [vmem:[%s972_s14 + $0x1d0] sm:$0xff]  ;;  %v251_v25 = vld [vmem:[%s972_s14 + $0x1c8] sm:$0xff]  ;;  %p777_p7 = pneg %p776_p13 }
  0x55   : > { %373 = vmatpush.xpose.msra.mxu0 %v285_v6  ;;  %413 = vmatpush.xpose.msra.mxu2 %v287_v7  ;;  %v288_v26 = vld [vmem:[%s972_s14 + $0x2f0] sm:$0xff]  ;;  %v243_v27 = vld [vmem:[%s972_s14 + $0x188] sm:$0xff]  ;;  %v245_v28 = vld [vmem:[%s972_s14 + $0x198] sm:$0xff] }
  0x56   : > { %393 = vmatpush.xpose.msra.mxu1 %v286_v8  ;;  %v244_v29 = vld [vmem:[%s972_s14 + $0x190] sm:$0xff]  ;;  %v281_v30 = vld [vmem:[%s972_s14 + $0x2b8] sm:$0xff]  ;;  %v238_v32 = vld [vmem:[%s972_s14 + $0x160] sm:$0xff]  ;;  %p782_p2 = pnand %p781_p0, %p777_p7 }
  0x57   : > { %432 = vmatpush.xpose.msra.mxu3 %v295_v22  ;;  %v236_v31 = vld [vmem:[%s972_s14 + $0x150] sm:$0xff]  ;;  %v237_v33 = vld [vmem:[%s972_s14 + $0x158] sm:$0xff]  ;;  %v274_v34 = vld [vmem:[%s972_s14 + $0x280] sm:$0xff] }
  0x58   : > { %v229_v35 = vld [vmem:[%s972_s14 + $0x118] sm:$0xff]  ;;  %v231_v36 = vld [vmem:[%s972_s14 + $0x128] sm:$0xff]  ;;  %v230_v37 = vld [vmem:[%s972_s14 + $0x120] sm:$0xff] }
  0x59   : > { %374 = vmatpush.xpose.msra.mxu0 %v278_v9  ;;  %414 = vmatpush.xpose.msra.mxu2 %v280_v10  ;;  %v267_v38 = vld [vmem:[%s972_s14 + $0x248] sm:$0xff]  ;;  %v222_v39 = vld [vmem:[%s972_s14 + $0xe0] sm:$0xff]  ;;  %v224_v40 = vld [vmem:[%s972_s14 + $0xf0] sm:$0xff] }
  0x5a   : > { %394 = vmatpush.xpose.msra.mxu1 %v279_v11  ;;  %v223_v41 = vld [vmem:[%s972_s14 + $0xe8] sm:$0xff]  ;;  %v260_v42 = vld [vmem:[%s972_s14 + $0x210] sm:$0xff]  ;;  %v217_v44 = vld [vmem:[%s972_s14 + $0xb8] sm:$0xff] }
  0x5b   : > { %433 = vmatpush.xpose.msra.mxu3 %v288_v26  ;;  %v215_v43 = vld [vmem:[%s972_s14 + $0xa8] sm:$0xff]  ;;  %v216_v45 = vld [vmem:[%s972_s14 + $0xb0] sm:$0xff]  ;;  %v253_v46 = vld [vmem:[%s972_s14 + $0x1d8] sm:$0xff] }
  0x5c   : > { %v208_v47 = vld [vmem:[%s972_s14 + $0x70] sm:$0xff]  ;;  %v210_v48 = vld [vmem:[%s972_s14 + $0x80] sm:$0xff]  ;;  %v209_v49 = vld [vmem:[%s972_s14 + $0x78] sm:$0xff] }
  0x5d   : > { %375 = vmatpush.xpose.msra.mxu0 %v271_v12  ;;  %415 = vmatpush.xpose.msra.mxu2 %v273_v13  ;;  %v246_v50 = vld [vmem:[%s972_s14 + $0x1a0] sm:$0xff]  ;;  %v201_v51 = vld [vmem:[%s972_s14 + $0x38] sm:$0xff]  ;;  %v203_v52 = vld [vmem:[%s972_s14 + $0x48] sm:$0xff] }
  0x5e   : > { %395 = vmatpush.xpose.msra.mxu1 %v272_v14  ;;  %v202_v53 = vld [vmem:[%s972_s14 + $0x40] sm:$0xff]  ;;  %v239_v54 = vld [vmem:[%s972_s14 + $0x168] sm:$0xff]  ;;  %v196_v56 = vld [vmem:[%s972_s14 + $0x10] sm:$0xff] }
  0x5f   : > { %434 = vmatpush.xpose.msra.mxu3 %v281_v30  ;;  %v194_v55 = vld [vmem:[%s972_s14] sm:$0xff]  ;;  %v303_v57 = vld [vmem:[%s972_s14 + $0x368] sm:$0xff]  ;;  %v305_v58 = vld [vmem:[%s972_s14 + $0x378] sm:$0xff] }
  0x60   : > { %v195_v59 = vld [vmem:[%s972_s14 + $0x8] sm:$0xff]  ;;  %v232_v60 = vld [vmem:[%s972_s14 + $0x130] sm:$0xff]  ;;  %v298_v63 = vld [vmem:[%s972_s14 + $0x340] sm:$0xff] }
  0x61   : > { %376 = vmatpush.xpose.msra.mxu0 %v264_v15  ;;  %416 = vmatpush.xpose.msra.mxu2 %v266_v16  ;;  %v304_v61 = vld [vmem:[%s972_s14 + $0x370] sm:$0xff]  ;;  %v225_v0 = vld [vmem:[%s972_s14 + $0xf8] sm:$0xff]  ;;  %v291_v3 = vld [vmem:[%s972_s14 + $0x308] sm:$0xff] }
  0x62   : > { %396 = vmatpush.xpose.msra.mxu1 %v265_v17  ;;  %v296_v62 = vld [vmem:[%s972_s14 + $0x330] sm:$0xff]  ;;  %v297_v1 = vld [vmem:[%s972_s14 + $0x338] sm:$0xff]  ;;  %v218_v4 = vld [vmem:[%s972_s14 + $0xc0] sm:$0xff] }
  0x63   : > { %435 = vmatpush.xpose.msra.mxu3 %v274_v34  ;;  %v289_v2 = vld [vmem:[%s972_s14 + $0x2f8] sm:$0xff]  ;;  %v290_v5 = vld [vmem:[%s972_s14 + $0x300] sm:$0xff]  ;;  %v284_v7 = vld [vmem:[%s972_s14 + $0x2d0] sm:$0xff] }
  0x64   : > { %v282_v6 = vld [vmem:[%s972_s14 + $0x2c0] sm:$0xff]  ;;  %v211_v8 = vld [vmem:[%s972_s14 + $0x88] sm:$0xff]  ;;  %v277_v11 = vld [vmem:[%s972_s14 + $0x298] sm:$0xff] }
  0x65   : > { %377 = vmatpush.xpose.msra.mxu0 %v257_v19  ;;  %417 = vmatpush.xpose.msra.mxu2 %v259_v20  ;;  %v283_v9 = vld [vmem:[%s972_s14 + $0x2c8] sm:$0xff]  ;;  %v204_v12 = vld [vmem:[%s972_s14 + $0x50] sm:$0xff]  ;;  %v270_v15 = vld [vmem:[%s972_s14 + $0x260] sm:$0xff] }
  0x66   : > { %397 = vmatpush.xpose.msra.mxu1 %v258_v21  ;;  %v275_v10 = vld [vmem:[%s972_s14 + $0x288] sm:$0xff]  ;;  %v276_v13 = vld [vmem:[%s972_s14 + $0x290] sm:$0xff]  ;;  %v197_v16 = vld [vmem:[%s972_s14 + $0x18] sm:$0xff] }
  0x67   : > { %436 = vmatpush.xpose.msra.mxu3 %v267_v38  ;;  %v268_v14 = vld [vmem:[%s972_s14 + $0x250] sm:$0xff]  ;;  %v1068_v17 = vld [vmem:[#allocation5] sm:$0x7f]  ;;  %v269_v18 = vld [vmem:[%s972_s14 + $0x258] sm:$0xff] }
  0x68   : > { %v309_v19 = vperm.slane %v1068_v17, 2  ;;  %v261_v20 = vld [vmem:[%s972_s14 + $0x218] sm:$0xff]  ;;  %v263_v21 = vld [vmem:[%s972_s14 + $0x228] sm:$0xff]  ;;  %v307_v22 = vperm.slane %v1068_v17, 0  ;;  %v254_v26 = vld [vmem:[%s972_s14 + $0x1e0] sm:$0xff] }
  0x69   : > { %378 = vmatpush.xpose.msra.mxu0 %v250_v23  ;;  %418 = vmatpush.xpose.msra.mxu2 %v252_v24  ;;  %v310_v23 = vperm.slane %v1068_v17, 3  ;;  %v262_v24 = vld [vmem:[%s972_s14 + $0x220] sm:$0xff]  ;;  %v249_v30 = vld [vmem:[%s972_s14 + $0x1b8] sm:$0xff] }
  0x6a   : > { %398 = vmatpush.xpose.msra.mxu1 %v251_v25  ;;  %v308_v25 = vperm.slane %v1068_v17, 1  ;;  %v241_v34 = vld [vmem:[%s972_s14 + $0x178] sm:$0xff]  ;;  %v226_v38 = vld [vmem:[%s972_s14 + $0x100] sm:$0xff] }
  0x6b   : > { %437 = vmatpush.xpose.msra.mxu3 %v260_v42  ;;  %v221_v42 = vld [vmem:[%s972_s14 + $0xd8] sm:$0xff] }
  0x6d   : > { %379 = vmatpush.xpose.msra.mxu0 %v243_v27  ;;  %419 = vmatpush.xpose.msra.mxu2 %v245_v28  ;;  %v256_v27 = vld [vmem:[%s972_s14 + $0x1f0] sm:$0xff]  ;;  %v255_v28 = vld [vmem:[%s972_s14 + $0x1e8] sm:$0xff] }
  0x6e   : > { %399 = vmatpush.xpose.msra.mxu1 %v244_v29  ;;  %v247_v29 = vld [vmem:[%s972_s14 + $0x1a8] sm:$0xff] }
  0x6f   : > { %438 = vmatpush.xpose.msra.mxu3 %v253_v46  ;;  %v213_v46 = vld [vmem:[%s972_s14 + $0x98] sm:$0xff] }
  0x71   : > { %380 = vmatpush.xpose.msra.mxu0 %v236_v31  ;;  %420 = vmatpush.xpose.msra.mxu2 %v238_v32  ;;  %v248_v31 = vld [vmem:[%s972_s14 + $0x1b0] sm:$0xff] }
  0x72   : > { %400 = vmatpush.xpose.msra.mxu1 %v237_v33  ;;  %v240_v32 = vld [vmem:[%s972_s14 + $0x170] sm:$0xff]  ;;  %v242_v33 = vld [vmem:[%s972_s14 + $0x180] sm:$0xff] }
  0x73   : > { %439 = vmatpush.xpose.msra.mxu3 %v246_v50  ;;  %v198_v50 = vld [vmem:[%s972_s14 + $0x20] sm:$0xff] }
  0x75   : > { %381 = vmatpush.xpose.msra.mxu0 %v229_v35  ;;  %421 = vmatpush.xpose.msra.mxu2 %v231_v36  ;;  %v233_v35 = vld [vmem:[%s972_s14 + $0x138] sm:$0xff]  ;;  %v235_v36 = vld [vmem:[%s972_s14 + $0x148] sm:$0xff] }
  0x76   : > { %401 = vmatpush.xpose.msra.mxu1 %v230_v37  ;;  %v234_v37 = vld [vmem:[%s972_s14 + $0x140] sm:$0xff] }
  0x77   : > { %440 = vmatpush.xpose.msra.mxu3 %v239_v54  ;;  %v313_v54 = vperm.slane %v1068_v17, 6 }
  0x79   : > { %382 = vmatpush.xpose.msra.mxu0 %v222_v39  ;;  %422 = vmatpush.xpose.msra.mxu2 %v224_v40  ;;  %v228_v39 = vld [vmem:[%s972_s14 + $0x110] sm:$0xff]  ;;  %v227_v40 = vld [vmem:[%s972_s14 + $0x108] sm:$0xff] }
  0x7a   : > { %402 = vmatpush.xpose.msra.mxu1 %v223_v41  ;;  %v219_v41 = vld [vmem:[%s972_s14 + $0xc8] sm:$0xff] }
  0x7b   : > { %441 = vmatpush.xpose.msra.mxu3 %v232_v60 }
  0x7d   : > { %383 = vmatpush.xpose.msra.mxu0 %v215_v43  ;;  %423 = vmatpush.xpose.msra.mxu2 %v217_v44  ;;  %v220_v43 = vld [vmem:[%s972_s14 + $0xd0] sm:$0xff] }
  0x7e   : > { %403 = vmatpush.xpose.msra.mxu1 %v216_v45  ;;  %v212_v44 = vld [vmem:[%s972_s14 + $0x90] sm:$0xff]  ;;  %v214_v45 = vld [vmem:[%s972_s14 + $0xa0] sm:$0xff] }
  0x7f   : > { %442 = vmatpush.xpose.msra.mxu3 %v225_v0 }
  0x81   : > { %384 = vmatpush.xpose.msra.mxu0 %v208_v47  ;;  %424 = vmatpush.xpose.msra.mxu2 %v210_v48  ;;  %v205_v47 = vld [vmem:[%s972_s14 + $0x58] sm:$0xff]  ;;  %v207_v48 = vld [vmem:[%s972_s14 + $0x68] sm:$0xff] }
  0x82   : > { %404 = vmatpush.xpose.msra.mxu1 %v209_v49  ;;  %v206_v49 = vld [vmem:[%s972_s14 + $0x60] sm:$0xff] }
  0x83   : > { %443 = vmatpush.xpose.msra.mxu3 %v218_v4 }
  0x85   : > { %385 = vmatpush.xpose.msra.mxu0 %v201_v51  ;;  %425 = vmatpush.xpose.msra.mxu2 %v203_v52  ;;  %v200_v51 = vld [vmem:[%s972_s14 + $0x30] sm:$0xff]  ;;  %v199_v52 = vld [vmem:[%s972_s14 + $0x28] sm:$0xff] }
  0x86   : > { %405 = vmatpush.xpose.msra.mxu1 %v202_v53  ;;  %v311_v53 = vperm.slane %v1068_v17, 4 }
  0x87   : > { %444 = vmatpush.xpose.msra.mxu3 %v211_v8 }
  0x89   : > { %386 = vmatpush.xpose.msra.mxu0 %v194_v55  ;;  %426 = vmatpush.xpose.msra.mxu2 %v196_v56  ;;  %v312_v55 = vperm.slane %v1068_v17, 5 }
  0x8a   : > { %406 = vmatpush.xpose.msra.mxu1 %v195_v59 }
  0x8b   : > { %445 = vmatpush.xpose.msra.mxu3 %v204_v12 }
  0x8c   : > { %427 = vmatmul.f32.vlgmr.msra.gmra.mxu2 %v309_v19  ;;  %387 = vmatmul.f32.vlgmr.msra.gmra.mxu0 %v307_v22 }
  0x8d   : > { %451 = vmatpush.xpose.msrb.mxu0 %v303_v57  ;;  %614 = vmatpush.xpose.msk.msrb.mxu2 %vm320_vm0, %v305_v58 }
  0x8e   : > { %471 = vmatpush.xpose.msrb.mxu1 %v304_v61 }
  0x8f   : > { %446 = vmatpush.xpose.msra.mxu3 %v197_v16  ;;  %407 = vmatmul.f32.vlgmr.msra.gmra.mxu1 %v308_v25 }
  0x91   : > { %452 = vmatpush.xpose.msrb.mxu0 %v296_v62  ;;  %615 = vmatpush.xpose.msk.msrb.mxu2 %vm320_vm0, %v298_v63 }
  0x92   : > { %472 = vmatpush.xpose.msrb.mxu1 %v297_v1  ;;  %447 = vmatmul.f32.vlgmr.msra.gmra.mxu3 %v310_v23 }
  0x95   : > { %453 = vmatpush.xpose.msrb.mxu0 %v289_v2  ;;  %616 = vmatpush.xpose.msk.msrb.mxu2 %vm320_vm0, %v291_v3 }
  0x96   : > { %473 = vmatpush.xpose.msrb.mxu1 %v290_v5 }
  0x99   : > { %454 = vmatpush.xpose.msrb.mxu0 %v282_v6  ;;  %617 = vmatpush.xpose.msk.msrb.mxu2 %vm320_vm0, %v284_v7 }
  0x9a   : > { %474 = vmatpush.xpose.msrb.mxu1 %v283_v9 }
  0x9d   : > { %455 = vmatpush.xpose.msrb.mxu0 %v275_v10  ;;  %618 = vmatpush.xpose.msk.msrb.mxu2 %vm320_vm0, %v277_v11 }
  0x9e   : > { %475 = vmatpush.xpose.msrb.mxu1 %v276_v13 }
  0xa1   : > { %456 = vmatpush.xpose.msrb.mxu0 %v268_v14  ;;  %619 = vmatpush.xpose.msk.msrb.mxu2 %vm320_vm0, %v270_v15 }
  0xa2   : > { %476 = vmatpush.xpose.msrb.mxu1 %v269_v18 }
  0xa5   : > { %457 = vmatpush.xpose.msrb.mxu0 %v261_v20  ;;  %620 = vmatpush.xpose.msk.msrb.mxu2 %vm320_vm0, %v263_v21 }
  0xa6   : > { %477 = vmatpush.xpose.msrb.mxu1 %v262_v24 }
  0xa9   : > { %458 = vmatpush.xpose.msrb.mxu0 %v254_v26  ;;  %621 = vmatpush.xpose.msk.msrb.mxu2 %vm320_vm0, %v256_v27 }
  0xaa   : > { %478 = vmatpush.xpose.msrb.mxu1 %v255_v28 }
  0xad   : > { %459 = vmatpush.xpose.msrb.mxu0 %v247_v29  ;;  %622 = vmatpush.xpose.msk.msrb.mxu2 %vm320_vm0, %v249_v30 }
  0xae   : > { %479 = vmatpush.xpose.msrb.mxu1 %v248_v31 }
  0xb1   : > { %460 = vmatpush.xpose.msrb.mxu0 %v240_v32  ;;  %623 = vmatpush.xpose.msk.msrb.mxu2 %vm320_vm0, %v242_v33 }
  0xb2   : > { %480 = vmatpush.xpose.msrb.mxu1 %v241_v34 }
  0xb5   : > { %461 = vmatpush.xpose.msrb.mxu0 %v233_v35  ;;  %624 = vmatpush.xpose.msk.msrb.mxu2 %vm320_vm0, %v235_v36 }
  0xb6   : > { %481 = vmatpush.xpose.msrb.mxu1 %v234_v37 }
  0xb9   : > { %462 = vmatpush.xpose.msrb.mxu0 %v226_v38  ;;  %625 = vmatpush.xpose.msk.msrb.mxu2 %vm320_vm0, %v228_v39 }
  0xba   : > { %482 = vmatpush.xpose.msrb.mxu1 %v227_v40 }
  0xbd   : > { %463 = vmatpush.xpose.msrb.mxu0 %v219_v41  ;;  %626 = vmatpush.xpose.msk.msrb.mxu2 %vm320_vm0, %v221_v42 }
  0xbe   : > { %483 = vmatpush.xpose.msrb.mxu1 %v220_v43 }
  0xc1   : > { %464 = vmatpush.xpose.msrb.mxu0 %v212_v44  ;;  %627 = vmatpush.xpose.msk.msrb.mxu2 %vm320_vm0, %v214_v45 }
  0xc2   : > { %484 = vmatpush.xpose.msrb.mxu1 %v213_v46 }
  0xc5   : > { %465 = vmatpush.xpose.msrb.mxu0 %v205_v47  ;;  %628 = vmatpush.xpose.msk.msrb.mxu2 %vm320_vm0, %v207_v48 }
  0xc6   : > { %485 = vmatpush.xpose.msrb.mxu1 %v206_v49 }
  0xc9   : > { %466 = vmatpush.xpose.msrb.mxu0 %v198_v50  ;;  %629 = vmatpush.xpose.msk.msrb.mxu2 %vm320_vm0, %v200_v51 }
  0xca   : > { %486 = vmatpush.xpose.msrb.mxu1 %v199_v52 }
  0xcc   : > { %467 = vmatmul.f32.vlgmr.msrb.gmra.mxu0 %v311_v53  ;;  %630 = vmatmul.msk.f32.vlgmr.msrb.gmra.mxu2 %vm320_vm0, %v313_v54 }
  0xcd   : > { %487 = vmatmul.f32.vlgmr.msrb.gmra.mxu1 %v312_v55 }
 0x109   : > { %v388_v57 = vpop.f32.mrf.mxu0 }
 0x10c   : > { %v408_v56 = vpop.f32.mrf.mxu1 }
 0x10d   : > { %v409_v58 = vadd.f32 %v408_v56, %v388_v57 }
 0x10f   : > { %v428_v59 = vpop.f32.mrf.mxu2 }
 0x110   : > { %v429_v60 = vadd.f32 %v428_v59, %v409_v58 }
 0x115   : > { %v448_v61 = vpop.f32.mrf.mxu3 }
 0x116   : > { %v449_v62 = vadd.f32 %v448_v61, %v429_v60 }
 0x149   : > { %v468_v63 = vpop.f32.mrf.mxu0 }
 0x14a   : > { %v469_v0 = vadd.f32 %v468_v63, %v449_v62  ;;  %v488_v1 = vpop.f32.mrf.mxu1 }
 0x14c   : > { %v489_v2 = vadd.f32 %v488_v1, %v469_v0 }
 0x14f   : > { %v508_v3 = vpop.f32.mrf.mxu2 }
 0x150   : > { %v509_v4 = vadd.f32 %v508_v3, %v489_v2 }
 0x152   : > { %511 = vst [vmem:[%s186_s16] sm:$0x1] %v509_v4 }
 0x153   : > { %785 = shalt.err (!%p782_p2)
}
 0x154   : > { %641 = dma.vmem_to_hbm [thread:$0]  (%p901_p11), %s524_s19, 16, %s526_s24, %s513_s28  }
 0x155 PF: > { %p653_p3 = scmp.ge.s32.totalorder %s828_s12, 2  ;;  %s537_s29 = sand.u32 1, %s816_s9  }
 0x156   : > { %p1165_p5 = scmp.ne.s32.totalorder %s1160_s22, 0  ;;  %s538_s4 = scalar_lea.sflag [#allocation4], %s537_s29 }
 0x158   : > { %p648_p8 = pnand %p653_p3, %p1165_p5 }
 0x15a   : > { %p649_p9 = pneg %p648_p8 }
 0x15c   : > { %811 = dma.done.wait (%p649_p9), %s538_s4, 16  }
 0x15d   : > { %813 = vsyncadd (%p649_p9), %s538_s4, 4294967280  ;;  %p16_p4 = scmp.ge.s32.totalorder %s874_s15, 5   ;;  %s1166_s9 = smov %s820_s10 }
 0x15e   : > { %s1167_s10 = smov %s824_s11  ;;  %s1168_s11 = smov %s886_s18 }
 0x15f   : > { %s1169_s12 = smov %s874_s15  ;;  %18 = sbr.rel (!%p16_p4) target bundleno = 6 (0x6), region = 77 }
 0x164   :  { %543 = vsyncpa [#allocation3], 1 }
 0x165   :  { %545 = vsyncpa [#allocation3 + $0x1], 1 }
 0x166   :  { %546 = vsyncpa [#allocation6], 1 }
 0x167   :  { %547 = vsyncpa [#allocation4], 1 }
 0x168   :  { %549 = vsyncpa [#allocation4 + $0x1], 1 }

</bundles_post_ra>
